<compile_context>
chip_gen: v6e
topology: v6e:2x2x1
jax: 0.10.0
libtpu: 0.0.40
codegen_flags: <defaults>
</compile_context>

<pallas_src>
import functools

import jax
import jax.numpy as jnp
from jax.experimental import pallas as pl
from jax.experimental.pallas import tpu as pltpu


def _round_up(x, m):
    return ((x + m - 1) // m) * m


def _pick_tile(dim, prefs):
    for t in prefs:
        if dim % t == 0:
            return t
    return dim  # full extent


# ----------------------------------------------------------------------------
# Pallas kernel 1: fused (A @ B) * scale + bias [+ ReLU] matmul (convs, MLPs)
#   A, B are bf16 (MXU-native); accumulation and epilogue are f32.
# ----------------------------------------------------------------------------
def _matmul_kernel_1k(a_ref, b_ref, scale_ref, bias_ref, o_ref, *, relu):
    # single K step: no accumulator scratch, no k grid axis
    y = jnp.dot(a_ref[...], b_ref[...], preferred_element_type=jnp.float32)
    y = y * scale_ref[...] + bias_ref[...]
    if relu:
        y = jnp.maximum(y, 0.0)
    o_ref[...] = y.astype(o_ref.dtype)


def _matmul_kernel_acc(a_ref, b_ref, scale_ref, bias_ref, o_ref, acc_ref, *, relu):
    @pl.when(pl.program_id(2) == 0)
    def _():
        acc_ref[...] = jnp.zeros_like(acc_ref)

    acc_ref[...] += jnp.dot(a_ref[...], b_ref[...],
                            preferred_element_type=jnp.float32)

    @pl.when(pl.program_id(2) == pl.num_programs(2) - 1)
    def _():
        y = acc_ref[...] * scale_ref[...] + bias_ref[...]
        if relu:
            y = jnp.maximum(y, 0.0)
        o_ref[...] = y.astype(o_ref.dtype)


def fused_matmul(a, packed, relu=False):
    """act((A @ Wp) * scale + bias); Wp/scale/bias pre-padded (Kp, Np) at init."""
    M0, K = a.shape
    Kp, Np = packed["w"].shape
    if K < Kp:                                    # conv path folds this into im2col
        a = jnp.pad(a, ((0, 0), (0, Kp - K)))
    if M0 % 8 != 0:                               # tiny-M (MLP) sublane alignment
        a = jnp.pad(a, ((0, 8 - M0 % 8), (0, 0)))
    M = a.shape[0]
    if a.dtype != jnp.bfloat16:
        a = a.astype(jnp.bfloat16)

    tm = _pick_tile(M, (256, 128))
    tn = _pick_tile(Np, (256, 128))
    tk = Kp if Kp <= 1024 else _pick_tile(Kp, (512, 384, 256, 128))
    nk = Kp // tk

    if nk == 1:
        out = pl.pallas_call(
            functools.partial(_matmul_kernel_1k, relu=relu),
            out_shape=jax.ShapeDtypeStruct((M, Np), jnp.float32),
            grid_spec=pltpu.PrefetchScalarGridSpec(
                num_scalar_prefetch=0,
                grid=(M // tm, Np // tn),
                in_specs=[
                    pl.BlockSpec((tm, Kp), lambda i, j: (i, 0)),
                    pl.BlockSpec((Kp, tn), lambda i, j: (0, j)),
                    pl.BlockSpec((1, tn), lambda i, j: (0, j)),
                    pl.BlockSpec((1, tn), lambda i, j: (0, j)),
                ],
                out_specs=pl.BlockSpec((tm, tn), lambda i, j: (i, j)),
            ),
            compiler_params=pltpu.CompilerParams(
                dimension_semantics=("parallel", "parallel")),
        )(a, packed["w"], packed["scale"], packed["bias"])
    else:
        out = pl.pallas_call(
            functools.partial(_matmul_kernel_acc, relu=relu),
            out_shape=jax.ShapeDtypeStruct((M, Np), jnp.float32),
            grid_spec=pltpu.PrefetchScalarGridSpec(
                num_scalar_prefetch=0,
                grid=(M // tm, Np // tn, nk),
                in_specs=[
                    pl.BlockSpec((tm, tk), lambda i, j, k: (i, k)),
                    pl.BlockSpec((tk, tn), lambda i, j, k: (k, j)),
                    pl.BlockSpec((1, tn), lambda i, j, k: (0, j)),
                    pl.BlockSpec((1, tn), lambda i, j, k: (0, j)),
                ],
                out_specs=pl.BlockSpec((tm, tn), lambda i, j, k: (i, j)),
                scratch_shapes=[pltpu.VMEM((tm, tn), jnp.float32)],
            ),
            compiler_params=pltpu.CompilerParams(
                dimension_semantics=("parallel", "parallel", "arbitrary")),
        )(a, packed["w"], packed["scale"], packed["bias"])
    return out[:M0]


# ----------------------------------------------------------------------------
# Pallas kernel 2: Explicit3D Hartley-volume central-slice (trilinear,
#   align_corners=True, zero padding) + fused experimental-CTF multiply.
#   All particles packed on one lane-dense axis of width N*Pp:
#     pre[0, n*Pp+p]  = sum_x Wx[n,p,x] * sum_{zy} vol[zy,x] * Wzy[n,p,zy]
#     post[0, n*Pp+p] = pre[0, n*Pp+p] * ctf[n, p]
#   The (zy) reduction runs on the MXU against the resident volume tile.
# ----------------------------------------------------------------------------
def _slice_ctf_kernel(wzy_ref, wx_ref, ctf_ref, vol_ref, pre_ref, post_ref):
    g = jnp.dot(vol_ref[...], wzy_ref[...],
                preferred_element_type=jnp.float32)           # (Sxp, tn)  MXU
    s = jnp.sum(g * wx_ref[...], axis=0, keepdims=True)       # (1, tn)    VPU+XLU
    pre_ref[...] = s
    post_ref[...] = s * ctf_ref[...]


def slice_volume_ctf_pallas(wzy_big, wx_big, ctf_big, vol_t):
    """wzy_big: (S2p, NPp), wx_big: (Sxp, NPp), ctf_big: (1, NPp),
    vol_t: (Sxp, S2p)  ->  (pre, post) each (1, NPp)."""
    S2p, NPp = wzy_big.shape
    Sxp = wx_big.shape[0]
    tn = _pick_tile(NPp, (512, 256, 128))
    return pl.pallas_call(
        _slice_ctf_kernel,
        out_shape=(jax.ShapeDtypeStruct((1, NPp), jnp.float32),
                   jax.ShapeDtypeStruct((1, NPp), jnp.float32)),
        grid_spec=pltpu.PrefetchScalarGridSpec(
            num_scalar_prefetch=0,
            grid=(NPp // tn,),
            in_specs=[
                pl.BlockSpec((S2p, tn), lambda j: (0, j)),
                pl.BlockSpec((Sxp, tn), lambda j: (0, j)),
                pl.BlockSpec((1, tn), lambda j: (0, j)),
                pl.BlockSpec((Sxp, S2p), lambda j: (0, 0)),   # volume stays resident
            ],
            out_specs=[pl.BlockSpec((1, tn), lambda j: (0, j)),
                       pl.BlockSpec((1, tn), lambda j: (0, j))],
        ),
        compiler_params=pltpu.CompilerParams(
            dimension_semantics=("parallel",)),
    )(wzy_big, wx_big, ctf_big, vol_t)


# ----------------------------------------------------------------------------
# Glue: conv-as-matmul, pooling, Gaussian bank, euler conversions, slicing prep
# ----------------------------------------------------------------------------
def _pack_matmul(w2d, scale_vec, bias_vec):
    """Store weight/scale/bias pre-padded to (Kp, Np) so per-call padding of
    B/scale/bias (and its HBM round trip) disappears."""
    K, N = w2d.shape
    Kp, Np = _round_up(K, 128), _round_up(N, 128)
    w = jnp.zeros((Kp, Np), jnp.bfloat16).at[:K, :N].set(w2d.astype(jnp.bfloat16))
    s = jnp.zeros((1, Np), jnp.float32).at[0, :N].set(scale_vec.astype(jnp.float32))
    b = jnp.zeros((1, Np), jnp.float32).at[0, :N].set(bias_vec.astype(jnp.float32))
    return {"w": w, "scale": s, "bias": b, "K": K, "N": N}


def _pack_conv(w4d, scale_vec, bias_vec, pool=False):
    kh, kw, cin, cout = w4d.shape
    p = _pack_matmul(w4d.reshape(kh * kw * cin, cout), scale_vec, bias_vec)
    p.update({"kh": kh, "kw": kw, "cin": cin, "cout": cout, "pool": pool})
    return p


def conv2d_same(x_nhwc, layer, relu=True):
    B, H, W, C = x_nhwc.shape
    kh, kw = layer["kh"], layer["kw"]
    assert layer["cin"] == C
    ph, pw = kh // 2, kw // 2
    xb = x_nhwc.astype(jnp.bfloat16)              # cast before im2col: half the traffic
    xp = jnp.pad(xb, ((0, 0), (ph, ph), (pw, pw), (0, 0)))
    cols = [xp[:, i:i + H, j:j + W, :] for i in range(kh) for j in range(kw)]
    K = kh * kw * C
    Kp = layer["w"].shape[0]
    if Kp > K:  # fold the K padding into the (single) im2col materialization
        cols.append(jnp.zeros((B, H, W, Kp - K), jnp.bfloat16))
    patches = jnp.concatenate(cols, axis=-1).reshape(B * H * W, Kp)
    # TODO(synk): at realistic sidelen, fuse im2col into the matmul index_map
    # (spatial-shift blocks / manual DMA) to avoid the 9x patches HBM round trip.
    y = fused_matmul(patches, layer, relu=relu)
    return y[:, :layer["cout"]].reshape(B, H, W, layer["cout"])


def maxpool2(x):
    B, H, W, C = x.shape
    return x.reshape(B, H // 2, 2, W // 2, 2, C).max(axis=(2, 4))


def gaussian_kernel_bank(ksize, variance, num_octaves, scaling):
    coords = jnp.linspace(-0.5, 0.5, ksize)
    yy, xx = jnp.meshgrid(coords, coords, indexing="ij")
    ks = []
    for i in range(num_octaves):
        v = variance * (scaling ** i)
        k = jnp.exp(-(xx ** 2 + yy ** 2) / (2.0 * v))
        ks.append(k / jnp.sum(k))
    return jnp.stack(ks, axis=-1)[:, :, None, :]           # (k, k, 1, num_octaves)


def _rot_z(t):
    c, s = jnp.cos(t), jnp.sin(t)
    o, z = jnp.ones_like(t), jnp.zeros_like(t)
    return jnp.stack([c, -s, z, s, c, z, z, z, o], axis=-1).reshape(t.shape + (3, 3))


def _rot_y(t):
    c, s = jnp.cos(t), jnp.sin(t)
    o, z = jnp.ones_like(t), jnp.zeros_like(t)
    return jnp.stack([c, z, s, z, o, z, -s, z, c], axis=-1).reshape(t.shape + (3, 3))


def euler_zyz_to_matrix(angles):
    # pytorch3d euler_angles_to_matrix(..., 'ZYZ'): R = Rz(a) @ Ry(b) @ Rz(g)
    a, b, g = angles[..., 0], angles[..., 1], angles[..., 2]
    return jnp.matmul(_rot_z(a), jnp.matmul(_rot_y(b), _rot_z(g)))


def matrix_to_euler_zyz(R):
    # inverse of the ZYZ factorization above
    alpha = jnp.arctan2(R[..., 1, 2], R[..., 0, 2])
    beta = jnp.arccos(jnp.clip(R[..., 2, 2], -1.0, 1.0))
    gamma = jnp.arctan2(R[..., 2, 1], -R[..., 2, 0])
    return jnp.stack([alpha, beta, gamma], axis=-1)


def explicit3d_slice_with_ctf(fvol, rotmat, ctf_np, r, S):
    """Slice the real Hartley volume along the rotated central plane
    (== torch grid_sample trilinear, align_corners=True, zero padding) and
    apply the per-particle CTF in the same kernel.
    fvol axes are [z, y, x]; flat convention z*S + y for the reduced axis."""
    N = rotmat.shape[0]
    P = S * S
    lin = jnp.linspace(-1.0, 1.0, S)
    Y, X = jnp.meshgrid(lin, lin, indexing="ij")             # rows=y, cols=x
    plane = jnp.stack([X, Y, jnp.zeros_like(X)], axis=-1).reshape(P, 3)
    coords = jnp.einsum("pc,ncd->npd", plane, rotmat)         # (N, P, 3)
    t = (coords + 1.0) * 0.5 * (S - 1)                        # align_corners=True

    grid = jnp.arange(S, dtype=jnp.int32)

    def axis_weights(tc):                                     # (N, P) -> (N, P, S)
        i0 = jnp.floor(tc)
        f = (tc - i0).astype(jnp.float32)
        i0 = i0.astype(jnp.int32)
        w0 = (1.0 - f)[..., None] * (grid == i0[..., None]).astype(jnp.float32)
        w1 = f[..., None] * (grid == (i0[..., None] + 1)).astype(jnp.float32)
        return w0 + w1     # out-of-range corners match no grid index -> weight 0

    Wx = axis_weights(t[..., 0])
    Wy = axis_weights(t[..., 1])
    Wz = axis_weights(t[..., 2])
    # combined (z, y) weights; index kj = z*S + y
    Wzy = (Wz[:, :, :, None] * Wy[:, :, None, :]).reshape(N, P, S * S)

    Pp = _round_up(P, 128)
    S2p = _round_up(S * S, 128)
    Sxp = _round_up(S, 128)
    NPp = N * Pp

    def to_big(w, last):   # (N, P, last) -> (last, N*Pp), particle-major columns
        w = jnp.pad(w, ((0, 0), (0, Pp - P), (0, 0)))        # (N, Pp, last)
        return jnp.transpose(w, (2, 0, 1)).reshape(last, NPp)

    Wzy_big = jnp.pad(to_big(Wzy, S * S), ((0, S2p - S * S), (0, 0)))
    Wx_big = jnp.pad(to_big(Wx, S), ((0, Sxp - S), (0, 0)))

    # volume as rows = z*S + y, cols = x, transposed to (x, z*S + y) and padded
    vol_t = jnp.transpose(fvol.reshape(S * S, S), (1, 0)).astype(jnp.float32)
    vol_t = jnp.pad(vol_t, ((0, Sxp - S), (0, S2p - S * S)))

    ctf_big = jnp.pad(ctf_np.astype(jnp.float32),
                      ((0, 0), (0, Pp - P))).reshape(1, NPp)

    pre, post = slice_volume_ctf_pallas(Wzy_big, Wx_big, ctf_big, vol_t)
    pre = pre.reshape(N, Pp)[:, :P].reshape(N, 1, S, S)
    post = post.reshape(N, Pp)[:, :P].reshape(N, 1, S, S)

    rr = 1.0 if r is None else r
    mask = ((X ** 2 + Y ** 2) <= rr * rr).astype(jnp.float32)[None, None]
    return pre, post, mask


# ----------------------------------------------------------------------------
# Parameters (deterministic, synthetic — no checkpoint loading)
# ----------------------------------------------------------------------------
def _normal(key, shape, std=0.05):
    return std * jax.random.normal(key, shape, dtype=jnp.float32)


def init_params(key, heads=3, sidelen=16, num_octaves=4, n_particles=8):
    keys = iter(jax.random.split(key, 64))
    params = {"heads": heads}

    # GaussianPyramid fixed filter bank, packed for the fused matmul kernel
    gw = gaussian_kernel_bank(11, 0.01, num_octaves, 10)
    params["gauss"] = _pack_conv(gw, jnp.ones((num_octaves,), jnp.float32),
                                 jnp.zeros((num_octaves,), jnp.float32))

    # TODO(synk): CNNEncoderVGG16 channel widths reduced (VGG16 -> 8/16/32) so the
    # kernel runs at small test shapes; structure (conv-BN-ReLU x2 + maxpool) kept.
    bn_scale = 1.0 / jnp.sqrt(1.0 + 1e-5)   # BN at init: gamma=1, beta=0, mean=0, var=1
    cnn_cfg = [(1 + num_octaves, 8, False), (8, 8, True),
               (8, 16, False), (16, 16, True),
               (16, 32, False), (32, 32, True)]
    cnn = []
    for cin, cout, pool in cnn_cfg:
        wconv = _normal(next(keys), (3, 3, cin, cout))
        bconv = _normal(next(keys), (cout,))
        cnn.append(_pack_conv(wconv, jnp.full((cout,), bn_scale, jnp.float32),
                              bconv * bn_scale, pool=pool))
    params["cnn"] = cnn

    # InMembraneCircleRegressor heads fused into 3 wide block-diagonal matmuls
    latent = (sidelen // 8) ** 2 * 32
    w1s, b1s, w2s, b2s, w3s, b3s = [], [], [], [], [], []
    for _ in range(heads):
        w1s.append(_normal(next(keys), (latent, 256))); b1s.append(_normal(next(keys), (256,)))
        w2s.append(_normal(next(keys), (256, 128)));    b2s.append(_normal(next(keys), (128,)))
        w3s.append(_normal(next(keys), (128, 2)));      b3s.append(_normal(next(keys), (2,)))
    w1f = jnp.concatenate(w1s, axis=1)                           # (latent, H*256)
    w2f = jnp.zeros((heads * 256, heads * 128), jnp.float32)
    w3f = jnp.zeros((heads * 128, heads * 2), jnp.float32)
    for h in range(heads):
        w2f = w2f.at[h * 256:(h + 1) * 256, h * 128:(h + 1) * 128].set(w2s[h])
        w3f = w3f.at[h * 128:(h + 1) * 128, h * 2:(h + 1) * 2].set(w3s[h])
    ones = lambda n: jnp.ones((n,), jnp.float32)
    params["head_l1"] = _pack_matmul(w1f, ones(heads * 256), jnp.concatenate(b1s))
    params["head_l2"] = _pack_matmul(w2f, ones(heads * 128), jnp.concatenate(b2s))
    params["head_l3"] = _pack_matmul(w3f, ones(heads * 2), jnp.concatenate(b3s))

    params["fvol"] = _normal(next(keys), (sidelen, sidelen, sidelen), std=0.1)
    # TODO(synk): ExperimentalCTF loads real_file_1/2 (.pt); replaced by a
    # deterministic synthetic per-particle CTF bank indexed by in_dict['idx'].
    params["ctf_bank"] = 0.5 + 0.5 * jax.nn.sigmoid(
        _normal(next(keys), (n_particles, sidelen, sidelen), std=1.0))
    return params


# ----------------------------------------------------------------------------
# CryoMEM forward (amortized, in_membrane, experimental CTF)
# ----------------------------------------------------------------------------
def cryomem_forward(params, in_dict, r=1.0):
    proj = in_dict["proj_input"]                 # (B, 1, S, S) NCHW like PyTorch
    B, _, S, _ = proj.shape
    heads = params["heads"]

    # GaussianPyramid: conv with fixed Gaussian bank, concat with input
    x = jnp.transpose(proj, (0, 2, 3, 1))        # NHWC
    filt = conv2d_same(x, params["gauss"], relu=False)
    x = jnp.concatenate([x, filt], axis=-1)      # (B, S, S, 1 + num_octaves)

    # CNN encoder (VGG-style, conv-BN-ReLU fused into the matmul epilogue)
    for layer in params["cnn"]:
        x = conv2d_same(x, layer, relu=True)
        if layer["pool"]:
            x = maxpool2(x)
    latent_code = x.reshape(B, -1)               # (B, latent_code_size)

    # Fused in-membrane circle regressors -> unit circle -> atan2
    h = fused_matmul(latent_code, params["head_l1"], relu=True)[:, :params["head_l1"]["N"]]
    h = fused_matmul(h, params["head_l2"], relu=True)[:, :params["head_l2"]["N"]]
    v = fused_matmul(h, params["head_l3"], relu=False)[:, :params["head_l3"]["N"]]
    v = v.reshape(B, heads, 2)
    v = v / (jnp.linalg.norm(v, axis=-1, keepdims=True) + 1e-8)
    gamma = jnp.arctan2(v[..., 1], v[..., 0])    # (B, heads)

    # pred_angles: alpha/beta from init_rots (ZYZ), gamma from regressors
    init_angles = matrix_to_euler_zyz(in_dict["init_rots"])        # (B, 3)
    pred_angles = jnp.stack([
        jnp.broadcast_to(init_angles[:, 0:1], (B, heads)),
        jnp.broadcast_to(init_angles[:, 1:2], (B, heads)),
        gamma], axis=-1)                                            # (B, heads, 3)
    pred_rotmat = euler_zyz_to_matrix(pred_angles.reshape(-1, 3))   # (B*heads, 3, 3)

    # Experimental CTF per particle, broadcast over heads (particle order b*heads+h)
    ctf = params["ctf_bank"][in_dict["idx"]]                        # (B, S, S)
    ctf_np = jnp.broadcast_to(ctf[:, None], (B, heads, S, S)).reshape(B * heads, S * S)

    # Explicit3D central slice + fused CTF multiply (single pallas_call)
    pre, post, mask = explicit3d_slice_with_ctf(params["fvol"], pred_rotmat,
                                                ctf_np, r, S)
    pred_fproj_prectf = pre.reshape(B, heads, S, S)
    pred_fproj = post.reshape(B, heads, S, S)
    expanded_mask = jnp.tile(mask, (B, 1, 1, 1))                    # (B, 1, S, S)

    return {"rotmat": pred_rotmat,
            "pred_fproj_prectf": pred_fproj_prectf,
            "mask": expanded_mask,
            "pred_fproj": pred_fproj}


# ----------------------------------------------------------------------------
if __name__ == "__main__":
    heads, sidelen, num_octaves, n_particles = 3, 16, 4, 8
    B = 2

    params = init_params(jax.random.PRNGKey(0), heads=heads, sidelen=sidelen,
                         num_octaves=num_octaves, n_particles=n_particles)

    kp, kr = jax.random.split(jax.random.PRNGKey(0), 2)
    proj_input = jax.random.normal(kp, (B, 1, sidelen, sidelen), jnp.float32)
    init_eulers = jax.random.uniform(kr, (B, 3), minval=-jnp.pi, maxval=jnp.pi)
    init_rots = euler_zyz_to_matrix(init_eulers)                 # (B, 3, 3)
    idx = jnp.arange(B, dtype=jnp.int32)

    in_dict = {"proj_input": proj_input, "init_rots": init_rots, "idx": idx}

    out = cryomem_forward(params, in_dict, r=1.0)
    jax.block_until_ready(out["pred_fproj"])

    assert out["rotmat"].shape == (B * heads, 3, 3)
    assert out["pred_fproj_prectf"].shape == (B, heads, sidelen, sidelen)
    assert out["mask"].shape == (B, 1, sidelen, sidelen)
    assert out["pred_fproj"].shape == (B, heads, sidelen, sidelen)
    print("KERNEL_OK")
</pallas_src>

<mosaic_0001>
module attributes {stable_mosaic.version = 11 : i64} {
  func.func @_matmul_kernel_1k(%arg0: i32, %arg1: i32, %arg2: memref<256x128xbf16, #tpu.memory_space<vmem>>, %arg3: memref<128x128xbf16, #tpu.memory_space<vmem>>, %arg4: memref<1x128xf32, #tpu.memory_space<vmem>>, %arg5: memref<1x128xf32, #tpu.memory_space<vmem>>, %arg6: memref<256x128xf32, #tpu.memory_space<vmem>>) attributes {dimension_semantics = [#tpu.dimension_semantics<parallel>, #tpu.dimension_semantics<parallel>], iteration_bounds = array<i64: 2, 1>, scalar_prefetch = 0 : i64, scratch_operands = 0 : i64, tpu.core_type = #tpu.core_type<tc>, window_params = [{transform_indices = @transform_0, window_bounds = array<i64: 256, 128>}, {transform_indices = @transform_1, window_bounds = array<i64: 128, 128>}, {transform_indices = @transform_2, window_bounds = array<i64: 1, 128>}, {transform_indices = @transform_3, window_bounds = array<i64: 1, 128>}, {transform_indices = @transform_4, window_bounds = array<i64: 256, 128>}]} {
    %c0 = arith.constant 0 : index
    %c0_0 = arith.constant 0 : index
    %0 = vector.load %arg2[%c0, %c0_0] : memref<256x128xbf16, #tpu.memory_space<vmem>>, vector<256x128xbf16>
    %c0_1 = arith.constant 0 : index
    %c0_2 = arith.constant 0 : index
    %1 = vector.load %arg3[%c0_1, %c0_2] : memref<128x128xbf16, #tpu.memory_space<vmem>>, vector<128x128xbf16>
    %cst = arith.constant dense<0.000000e+00> : vector<256x128xf32>
    %2 = tpu.matmul %0, %1, %cst {dimension_numbers = #tpu.dot_dimension_numbers<[1], [0], [0], [1], [0, 0, 1, 1], [], []>} : vector<256x128xbf16>, vector<128x128xbf16>, vector<256x128xf32> -> vector<256x128xf32>
    %c0_3 = arith.constant 0 : index
    %c0_4 = arith.constant 0 : index
    %3 = vector.load %arg4[%c0_3, %c0_4] : memref<1x128xf32, #tpu.memory_space<vmem>>, vector<1x128xf32>
    %4 = vector.broadcast %3 : vector<1x128xf32> to vector<256x128xf32>
    %5 = arith.mulf %2, %4 : vector<256x128xf32>
    %c0_5 = arith.constant 0 : index
    %c0_6 = arith.constant 0 : index
    %6 = vector.load %arg5[%c0_5, %c0_6] : memref<1x128xf32, #tpu.memory_space<vmem>>, vector<1x128xf32>
    %7 = vector.broadcast %6 : vector<1x128xf32> to vector<256x128xf32>
    %8 = arith.addf %5, %7 : vector<256x128xf32>
    %c0_7 = arith.constant 0 : index
    %c0_8 = arith.constant 0 : index
    %9 = vector.load %arg6[%c0_7, %c0_8] : memref<256x128xf32, #tpu.memory_space<vmem>>, vector<256x128xf32>
    tpu.vector_store %arg6[%c0_7, %c0_8], %8 {strides = array<i32>} : memref<256x128xf32, #tpu.memory_space<vmem>>, vector<256x128xf32>,
    return
  }
  func.func @transform_0(%arg0: i32, %arg1: i32) -> (i32, i32) {
    %c0_i32 = arith.constant 0 : i32
    %c0_i32_0 = arith.constant 0 : i32
    return %arg0, %c0_i32 : i32, i32
  }
  func.func @transform_1(%arg0: i32, %arg1: i32) -> (i32, i32) {
    %c0_i32 = arith.constant 0 : i32
    %c0_i32_0 = arith.constant 0 : i32
    return %c0_i32, %arg1 : i32, i32
  }
  func.func @transform_2(%arg0: i32, %arg1: i32) -> (i32, i32) {
    %c0_i32 = arith.constant 0 : i32
    %c0_i32_0 = arith.constant 0 : i32
    return %c0_i32, %arg1 : i32, i32
  }
  func.func @transform_3(%arg0: i32, %arg1: i32) -> (i32, i32) {
    %c0_i32 = arith.constant 0 : i32
    %c0_i32_0 = arith.constant 0 : i32
    return %c0_i32, %arg1 : i32, i32
  }
  func.func @transform_4(%arg0: i32, %arg1: i32) -> (i32, i32) {
    %c0_i32 = arith.constant 0 : i32
    return %arg0, %arg1 : i32, i32
  }
}

</mosaic_0001>

<bundles_post_ra>
// kernel: tpu_custom_call.1
= control target key start
LH: loop header
LB: loop body
LE: loop exit
PB: predicated region body
PF: predicated region fallthrough
CT: control target
= control target key end

     0   :  { %s1603_s0 = inlined_call_operand.hbm [shape: bf16[512,128], index: 0, kind: input, shape index: {}]   ;;  %s1604_s1 = inlined_call_operand.hbm [shape: bf16[128,128], index: 1, kind: input, shape index: {}]   ;;  %s1605_s2 = inlined_call_operand.vmem [shape: f32[1,128], index: 2, kind: input, shape index: {}]   ;;  %s1606_s3 = inlined_call_operand.vmem [shape: f32[1,128], index: 3, kind: input, shape index: {}]   ;;  %s1607_s4 = inlined_call_operand.hbm [shape: f32[512,128], index: 4, kind: output, shape index: {}]  }
   0x1   :  { %1611 = sst [smem:[#allocation11_spill]] %s1604_s1 }
   0x2   :  { %9 = vsyncpa [#allocation3], 0 }
   0x3   :  { %11 = vsyncpa [#allocation3 + $0x1], 0 }
   0x4   :  { %12 = vsyncpa [#allocation6], 0 }
   0x5   :  { %13 = vsyncpa [#allocation4], 0 }
   0x6   :  { %15 = vsyncpa [#allocation4 + $0x1], 0  ;;  %s1288_s15 = smov 0   ;;  %s1290_s16 = smov 0  }
   0x7   :  { %s1292_s17 = smov 0   ;;  %s1294_s18 = smov 0  }
   0x8   :  { %s1296_s19 = smov 0   ;;  %s1298_s20 = smov 0  }
   0x9 LB: > { %s880_s21 = sadd.s32 4294967295, %s1254_s20   ;;  %s881_s22 = sadd.s32 4294967294, %s1254_s20   ;;  %s1254_s20 = sphi %s1298_s20, %s21_s20   ;;  %s1250_s19 = sphi %s1296_s19, %s1631_s19   ;;  %s1246_s18 = sphi %s1294_s18, %s1630_s18   ;;  %s1242_s17 = sphi %s1292_s17, %s1629_s17   ;;  %s1238_s16 = sphi %s1290_s16, %s1628_s16   ;;  %s1234_s15 = sphi %s1288_s15, %s1627_s15  }
   0xa   : > { %p53_p0 = scmp.ne.s32.totalorder %s1238_s16, %s1234_s15  ;;  %p1322_p1 = scmp.eq.s32.totalorder %s880_s21, 0 }
   0xb   : > { %p1326_p2 = scmp.eq.s32.totalorder %s880_s21, 1  ;;  %p163_p3 = scmp.eq.s32.totalorder %s881_s22, 1 }
   0xc   : > { %p1332_p4 = por %p1322_p1, %p53_p0  ;;  %p882_p5 = scmp.ge.s32.totalorder %s1254_s20, 1 }
   0xd   : > { %p1337_p6 = por %p163_p3, %p53_p0  ;;  %p170_p7 = scmp.lt.s32.totalorder %s1254_s20, 3 }
   0xe   : > { %s1614_s25 = scalar_select %p1332_p4, 1, 0 }
   0xf   : > { %s1615_s26 = scalar_select %p1337_p6, 1, 0 }
  0x10   : > { %p1342_p8 = pnand %p882_p5, %p170_p7  ;;  %s1256_s28 = smov [#allocation5]  }
  0x11   : > { %s184_s29 = sshll.u32 %s1256_s28, 4  ;;  %s33_s5 = sadd.s32 1, %s1250_s19  ;;  %s185_s29 = int_to_ptr.vmem [resolvable:$true] %s184_s29 }
  0x12   : > { %p1023_p9 = pneg %p1342_p8  ;;  %s1127_s6 = scalar_lea.vmem %s185_s29, 1024 }
  0x13   : > { %p1128_p13 = scmp.ne.s32.totalorder %s185_s29, %s1127_s6  ;;  %p1135_p5 = scmp.lt.s32.totalorder %s185_s29, %s185_s29 }
  0x14   : > { %p1351_p11 = pnand %p1023_p9, %p1322_p1  ;;  %p1136_p7 = scmp.lt.s32.totalorder %s1127_s6, %s1127_s6 }
  0x16   : > { %p1118_p12 = pneg %p1351_p11  ;;  %p1137_p6 = por %p1136_p7, %p1135_p5 }
  0x18   : > { %p1130_p0 = pnand %p1128_p13, %p1118_p12 }
  0x1a   : > { %p1131_p3 = pneg %p1130_p0 }
  0x1c   : > { %p1138_p4 = pnand %p1137_p6, %p1131_p3 }
  0x1e   : > { %1141 = shalt.err (!%p1138_p4)
}
  0x1f   : > { %s1609_s7 = smov 64   ;;  %s1610_s8 = smov 4  }
  0x20   : > { %s1618_s1 = sld [smem:[#allocation11_spill]]  ;;  %p35_p4 = scmp.ge.s32.totalorder %s33_s5, 2 }
  0x21   : > { %s40_s11 = sadd.s32 1, %s1242_s17  ;;  %p47_p6 = scmp.ne.s32.totalorder %s1242_s17, %s1238_s16 }
  0x22   : > { %p48_p9 = scmp.eq.s32.totalorder %s1254_s20, 0  ;;  %s1633_s5 = smov (%p35_p4, %s33_s5), 0 }
  0x23   : > { %p1378_p13 = por %p1326_p2, %p47_p6  ;;  %s37_s14 = ssub.s32 %s1250_s19, %s1633_s5 }
  0x24   : > { %p1372_p12 = por %p48_p9, %p47_p6  ;;  %p1036_p0 = scmp.lt.s32.totalorder %s1254_s20, 2 }
  0x25   : > { %s210_s21 = sand.u32 1, %s1242_s17  }
  0x26   : > { %1026 = dma.hbm_to_vmem [thread:$0]  (!%p1351_p11), %s1618_s1, 1024, %s185_s29, [#allocation6], %s1609_s7, %s1609_s7, %s1610_s8  }
  0x27   : > { %p38_p11 = scmp.eq.s32.totalorder %s37_s14, 0  ;;  %s887_s22 = sshll.u32 %s210_s21, 7 }
  0x28   : > { %s925_s29 = sshll.u32 %s1250_s19, 11  ;;  %s214_s10 = scalar_lea.vmem [#allocation2], %s887_s22 }
  0x29   : > { %s1387_s28 = scalar_select %p38_p11, %s1242_s17, %s40_s11  }
  0x2a   : > { %s220_s9 = scalar_lea.hbm %s1603_s0, %s925_s29  ;;  %s221_s7 = sshll.u32 %s214_s10, 4  ;;  %s222_s7 = int_to_ptr.vmem [resolvable:$true] %s221_s7 }
  0x2b   : > { %p1395_p2 = pnand %p1036_p0, %p1372_p12  ;;  %s211_s8 = scalar_lea.sflag [#allocation3], %s210_s21 }
  0x2c   : > { %s1155_s14 = scalar_lea.vmem %s222_s7, 2048  ;;  %s1259_s11 = smov [#allocation2]  }
  0x2d   : > { %p1144_p3 = pneg %p1395_p2  ;;  %p1156_p5 = scmp.ne.s32.totalorder %s222_s7, %s1155_s14 }
  0x2e   : > { %s1160_s1 = sshll.u32 %s1259_s11, 4  ;;  %s1161_s1 = int_to_ptr.vmem [resolvable:$false] %s1160_s1 }
  0x2f   : > { %p1158_p7 = pnand %p1156_p5, %p1144_p3  ;;  %s1162_s29 = scalar_lea.vmem %s1161_s1, 4096 }
  0x30   : > { %p1163_p6 = scmp.lt.s32.totalorder %s222_s7, %s1161_s1  ;;  %p1164_p9 = scmp.lt.s32.totalorder %s1162_s29, %s1155_s14 }
  0x31   : > { %p1159_p4 = pneg %p1158_p7 }
  0x32   : > { %p1165_p11 = por %p1164_p9, %p1163_p6 }
  0x34   : > { %p1166_p10 = pnand %p1165_p11, %p1159_p4 }
  0x36   : > { %1169 = shalt.err (!%p1166_p10)
}
  0x37   : > { %s1622_s12 = smov 4   ;;  %s1623_s22 = smov 64  }
  0x38   : > { %1030 = dma.hbm_to_vmem [thread:$0]  (!%p1395_p2), %s220_s9, 2048, %s222_s7, %s211_s8, %s1623_s22, %s1623_s22, %s1622_s12  }
  0x39   : > { %233 = sbr.rel (%p1342_p8) target bundleno = 339 (0x153), region = 36  ;;  %s1409_s21 = sand.u32 (!%p1342_p8), 1, %s1238_s16  }
  0x3a   : > { %s891_s1 = sshll.u32 (!%p1342_p8), %s1409_s21, 7  ;;  %s236_s30 = scalar_lea.sflag (!%p1342_p8), [#allocation3], %s1409_s21 }
  0x3b   : > { %s1413_s6 = scalar_lea.vmem (!%p1342_p8), [#allocation2], %s891_s1  ;;  %p1624_p10 = scmp.ne.s32.totalorder (!%p1342_p8), %s1614_s25, 0 }
  0x3e   : > { %1221 = dma.done.wait (%p1624_p10), %s236_s30, 2048  }
  0x3f   : > { %1223 = vsyncadd (%p1624_p10), %s236_s30, 4294965248 }
  0x40   : > { %1225 = dma.done.wait (%p1322_p1), [#allocation6], 1024  }
  0x41   : > { %1227 = vsyncadd (%p1322_p1), [#allocation6], 4294966272  ;;  %v1092_v0 = vld [vmem:[#allocation5 + $0x38] sm:$0xff]   ;;  %v1093_v1 = vld [vmem:[#allocation5 + $0x30] sm:$0xff]   ;;  %s893_s27 = sshll.u32 %s1409_s21, 8  ;;  %s926_s10 = sshll.u32 %s1246_s18, 12 }
  0x42   : > { %951 = vmatprep.subr.bf16.mxu0 %v1092_v0  ;;  %999 = vmatprep.subr.bf16.mxu1 %v1092_v0  ;;  %v1094_v2 = vld [vmem:[#allocation5 + $0x28] sm:$0xff]   ;;  %v1095_v3 = vld [vmem:[#allocation5 + $0x20] sm:$0xff]   ;;  %v1096_v6 = vld [vmem:[#allocation5 + $0x18] sm:$0xff]   ;;  %s1456_s9 = scalar_lea.vmem [#allocation7], %s893_s27  ;;  %s1547_s18 = scalar_lea.hbm %s1607_s4, %s926_s10 }
  0x43   : > { %952 = vmatpush3.bf16.msra.mxu0 %v1092_v0  ;;  %1007 = vmatpush3.bf16.msra.mxu1 %v1092_v0  ;;  %v1100_v4 = vld [vmem:[%s1413_s6] sm:$0xff]   ;;  %v1097_v7 = vld [vmem:[#allocation5 + $0x10] sm:$0xff]   ;;  %v1098_v8 = vld [vmem:[#allocation5 + $0x8] sm:$0xff]   ;;  %s761_s24 = sshll.u32 %s1456_s9, 4  ;;  %s747_s29 = scalar_lea.sflag [#allocation4], %s1409_s21  ;;  %s1549_s24 = int_to_ptr.vmem [resolvable:$true] %s761_s24 }
  0x44   : > { %953 = vmatprep.subr.bf16.mxu0 %v1093_v1  ;;  %1000 = vmatprep.subr.bf16.mxu1 %v1093_v1  ;;  %v1101_v5 = vld [vmem:[%s1413_s6 + $0x40] sm:$0xff]   ;;  %v1102_v10 = vld [vmem:[%s1413_s6 + $0x8] sm:$0xff]   ;;  %v1104_v12 = vld [vmem:[%s1413_s6 + $0x10] sm:$0xff]   ;;  %s1170_s12 = scalar_lea.vmem %s1549_s24, 4096  ;;  %s1260_s22 = smov [#allocation7]  }
  0x45   : > { %967 = vmatprep.mubr.bf16.mxu0 %v1100_v4  ;;  %983 = vmatprep.mubr.bf16.mxu1 %v1101_v5  ;;  %v1099_v9 = vld [vmem:[#allocation5] sm:$0xff]   ;;  %v1103_v11 = vld [vmem:[%s1413_s6 + $0x48] sm:$0xff]   ;;  %v1105_v13 = vld [vmem:[%s1413_s6 + $0x50] sm:$0xff]   ;;  %p1171_p1 = scmp.ne.s32.totalorder %s1549_s24, %s1170_s12  ;;  %s1174_s1 = sshll.u32 %s1260_s22, 4  ;;  %s1175_s1 = int_to_ptr.vmem [resolvable:$false] %s1174_s1 }
  0x46   : > { %v1106_v14 = vld [vmem:[%s1413_s6 + $0x18] sm:$0xff]   ;;  %v1108_v16 = vld [vmem:[%s1413_s6 + $0x20] sm:$0xff]   ;;  %v1110_v18 = vld [vmem:[%s1413_s6 + $0x28] sm:$0xff]   ;;  %s1176_s30 = scalar_lea.vmem %s1175_s1, 8192  ;;  %p1177_p0 = scmp.lt.s32.totalorder %s1549_s24, %s1175_s1 }
  0x47   : > { %954 = vmatpush3.bf16.msra.mxu0 %v1093_v1  ;;  %1008 = vmatpush3.bf16.msra.mxu1 %v1093_v1  ;;  %v1107_v15 = vld [vmem:[%s1413_s6 + $0x58] sm:$0xff]   ;;  %v1109_v17 = vld [vmem:[%s1413_s6 + $0x60] sm:$0xff]   ;;  %v1111_v19 = vld [vmem:[%s1413_s6 + $0x68] sm:$0xff]   ;;  %p1172_p8 = pnand %p1171_p1, %p1378_p13  ;;  %p1178_p2 = scmp.lt.s32.totalorder %s1176_s30, %s1170_s12 }
  0x48   : > { %955 = vmatprep.subr.bf16.mxu0 %v1094_v2  ;;  %1001 = vmatprep.subr.bf16.mxu1 %v1094_v2  ;;  %v1112_v20 = vld [vmem:[%s1413_s6 + $0x30] sm:$0xff]   ;;  %v1114_v22 = vld [vmem:[%s1413_s6 + $0x38] sm:$0xff]   ;;  %v1442_v24 = vld [vmem:[%s1605_s2] ss:$0 sm:$0xff] }
  0x49   : > { %v1113_v21 = vld [vmem:[%s1413_s6 + $0x70] sm:$0xff]   ;;  %v1115_v23 = vld [vmem:[%s1413_s6 + $0x78] sm:$0xff]   ;;  %v1448_v26 = vld [vmem:[%s1606_s3] ss:$0 sm:$0xff]  ;;  %p1173_p12 = pneg %p1172_p8  ;;  %p1179_p3 = por %p1178_p2, %p1177_p0 }
  0x4b   : > { %956 = vmatpush3.bf16.msra.mxu0 %v1094_v2  ;;  %1009 = vmatpush3.bf16.msra.mxu1 %v1094_v2  ;;  %p1180_p5 = pnand %p1179_p3, %p1173_p12 }
  0x4c   : > { %957 = vmatprep.subr.bf16.mxu0 %v1095_v3  ;;  %1002 = vmatprep.subr.bf16.mxu1 %v1095_v3 }
  0x4f   : > { %958 = vmatpush3.bf16.msra.mxu0 %v1095_v3  ;;  %1010 = vmatpush3.bf16.msra.mxu1 %v1095_v3 }
  0x50   : > { %959 = vmatprep.subr.bf16.mxu0 %v1096_v6  ;;  %1003 = vmatprep.subr.bf16.mxu1 %v1096_v6 }
  0x53   : > { %960 = vmatpush3.bf16.msra.mxu0 %v1096_v6  ;;  %1011 = vmatpush3.bf16.msra.mxu1 %v1096_v6 }
  0x54   : > { %961 = vmatprep.subr.bf16.mxu0 %v1097_v7  ;;  %1004 = vmatprep.subr.bf16.mxu1 %v1097_v7 }
  0x57   : > { %962 = vmatpush3.bf16.msra.mxu0 %v1097_v7  ;;  %1012 = vmatpush3.bf16.msra.mxu1 %v1097_v7 }
  0x58   : > { %963 = vmatprep.subr.bf16.mxu0 %v1098_v8  ;;  %1005 = vmatprep.subr.bf16.mxu1 %v1098_v8 }
  0x5b   : > { %964 = vmatpush3.bf16.msra.mxu0 %v1098_v8  ;;  %1013 = vmatpush3.bf16.msra.mxu1 %v1098_v8 }
  0x5c   : > { %965 = vmatprep.subr.bf16.mxu0 %v1099_v9  ;;  %1006 = vmatprep.subr.bf16.mxu1 %v1099_v9 }
  0x5f   : > { %966 = vmatpush3.bf16.msra.mxu0 %v1099_v9  ;;  %1014 = vmatpush3.bf16.msra.mxu1 %v1099_v9 }
  0x62   : > { %968 = vmatmul.mubr.bf16.vlgmr.msra.gmra.mxu0 %v1102_v10  ;;  %984 = vmatmul.mubr.bf16.vlgmr.msra.gmra.mxu1 %v1103_v11 }
  0x63   : > { %971 = vmatprep.mubr.bf16.mxu0 %v1104_v12  ;;  %987 = vmatprep.mubr.bf16.mxu1 %v1105_v13 }
  0x6a   : > { %972 = vmatmul.mubr.bf16.gmra.mxu0 %v1106_v14  ;;  %988 = vmatmul.mubr.bf16.gmra.mxu1 %v1107_v15 }
  0x6b   : > { %975 = vmatprep.mubr.bf16.mxu0 %v1108_v16  ;;  %991 = vmatprep.mubr.bf16.mxu1 %v1109_v17 }
  0x72   : > { %976 = vmatmul.mubr.bf16.gmra.mxu0 %v1110_v18  ;;  %992 = vmatmul.mubr.bf16.gmra.mxu1 %v1111_v19 }
  0x73   : > { %979 = vmatprep.mubr.bf16.mxu0 %v1112_v20  ;;  %995 = vmatprep.mubr.bf16.mxu1 %v1113_v21 }
  0x7a   : > { %980 = vmatmul.mubr.bf16.gmra.mxu0 %v1114_v22  ;;  %996 = vmatmul.mubr.bf16.gmra.mxu1 %v1115_v23 }
 0x122   : > { %v969_v25 = vpop.f32.mrf.mxu0  ;;  %v985_v27 = vpop.f32.mrf.mxu1 }
 0x123   : > { %v645_v28 = vmul.f32 %v969_v25, %v1442_v24  ;;  %v661_v29 = vmul.f32 %v985_v27, %v1442_v24 }
 0x124   : > { %v509_v30 = vpop.f32.mrf.mxu0  ;;  %v573_v31 = vpop.f32.mrf.mxu1 }
 0x125   : > { %v684_v32 = vadd.f32 %v1448_v26, %v645_v28  ;;  %v700_v33 = vadd.f32 %v1448_v26, %v661_v29  ;;  %v643_v34 = vmul.f32 %v1442_v24, %v509_v30  ;;  %v659_v35 = vmul.f32 %v1442_v24, %v573_v31 }
 0x126   : > { %v970_v36 = vpop.f32.mrf.mxu0  ;;  %v986_v37 = vpop.f32.mrf.mxu1 }
 0x127   : > { %716 = vst [vmem:[%s1456_s9 + $0x10] sm:$0xff] %v684_v32  ;;  %732 = vst [vmem:[%s1456_s9 + $0x90] sm:$0xff] %v700_v33  ;;  %v682_v38 = vadd.f32 %v1448_v26, %v643_v34  ;;  %v698_v39 = vadd.f32 %v1448_v26, %v659_v35  ;;  %v646_v40 = vmul.f32 %v970_v36, %v1442_v24 }
 0x128   : > { %v662_v41 = vmul.f32 %v986_v37, %v1442_v24  ;;  %v512_v42 = vpop.f32.mrf.mxu0  ;;  %v576_v43 = vpop.f32.mrf.mxu1 }
 0x129   : > { %714 = vst [vmem:[%s1456_s9] sm:$0xff] %v682_v38  ;;  %730 = vst [vmem:[%s1456_s9 + $0x80] sm:$0xff] %v698_v39  ;;  %v685_v44 = vadd.f32 %v1448_v26, %v646_v40  ;;  %v644_v46 = vmul.f32 %v1442_v24, %v512_v42  ;;  %v660_v47 = vmul.f32 %v1442_v24, %v576_v43 }
 0x12a   : > { %v701_v45 = vadd.f32 %v1448_v26, %v662_v41  ;;  %v973_v48 = vpop.f32.mrf.mxu0  ;;  %v989_v49 = vpop.f32.mrf.mxu1 }
 0x12b   : > { %717 = vst [vmem:[%s1456_s9 + $0x18] sm:$0xff] %v685_v44  ;;  %v683_v50 = vadd.f32 %v1448_v26, %v644_v46  ;;  %v699_v51 = vadd.f32 %v1448_v26, %v660_v47  ;;  %v649_v52 = vmul.f32 %v973_v48, %v1442_v24  ;;  %v665_v53 = vmul.f32 %v989_v49, %v1442_v24 }
 0x12c   : > { %733 = vst [vmem:[%s1456_s9 + $0x98] sm:$0xff] %v701_v45  ;;  %v525_v54 = vpop.f32.mrf.mxu0  ;;  %v589_v55 = vpop.f32.mrf.mxu1 }
 0x12d   : > { %715 = vst [vmem:[%s1456_s9 + $0x8] sm:$0xff] %v683_v50  ;;  %731 = vst [vmem:[%s1456_s9 + $0x88] sm:$0xff] %v699_v51  ;;  %v688_v56 = vadd.f32 %v1448_v26, %v649_v52  ;;  %v704_v57 = vadd.f32 %v1448_v26, %v665_v53  ;;  %v647_v58 = vmul.f32 %v1442_v24, %v525_v54 }
 0x12e   : > { %v663_v59 = vmul.f32 %v1442_v24, %v589_v55  ;;  %v974_v60 = vpop.f32.mrf.mxu0  ;;  %v990_v61 = vpop.f32.mrf.mxu1 }
 0x12f   : > { %720 = vst [vmem:[%s1456_s9 + $0x30] sm:$0xff] %v688_v56  ;;  %736 = vst [vmem:[%s1456_s9 + $0xb0] sm:$0xff] %v704_v57  ;;  %v686_v62 = vadd.f32 %v1448_v26, %v647_v58  ;;  %v650_v0 = vmul.f32 %v974_v60, %v1442_v24  ;;  %v666_v1 = vmul.f32 %v990_v61, %v1442_v24 }
 0x130   : > { %v702_v63 = vadd.f32 %v1448_v26, %v663_v59  ;;  %v528_v2 = vpop.f32.mrf.mxu0  ;;  %v592_v3 = vpop.f32.mrf.mxu1 }
 0x131   : > { %718 = vst [vmem:[%s1456_s9 + $0x20] sm:$0xff] %v686_v62  ;;  %v689_v4 = vadd.f32 %v1448_v26, %v650_v0  ;;  %v705_v5 = vadd.f32 %v1448_v26, %v666_v1  ;;  %v648_v6 = vmul.f32 %v1442_v24, %v528_v2  ;;  %v664_v7 = vmul.f32 %v1442_v24, %v592_v3 }
 0x132   : > { %734 = vst [vmem:[%s1456_s9 + $0xa0] sm:$0xff] %v702_v63  ;;  %v977_v8 = vpop.f32.mrf.mxu0  ;;  %v993_v9 = vpop.f32.mrf.mxu1 }
 0x133   : > { %721 = vst [vmem:[%s1456_s9 + $0x38] sm:$0xff] %v689_v4  ;;  %737 = vst [vmem:[%s1456_s9 + $0xb8] sm:$0xff] %v705_v5  ;;  %v687_v10 = vadd.f32 %v1448_v26, %v648_v6  ;;  %v703_v11 = vadd.f32 %v1448_v26, %v664_v7  ;;  %v653_v12 = vmul.f32 %v977_v8, %v1442_v24 }
 0x134   : > { %v669_v13 = vmul.f32 %v993_v9, %v1442_v24  ;;  %v541_v14 = vpop.f32.mrf.mxu0  ;;  %v605_v15 = vpop.f32.mrf.mxu1 }
 0x135   : > { %719 = vst [vmem:[%s1456_s9 + $0x28] sm:$0xff] %v687_v10  ;;  %735 = vst [vmem:[%s1456_s9 + $0xa8] sm:$0xff] %v703_v11  ;;  %v692_v16 = vadd.f32 %v1448_v26, %v653_v12  ;;  %v651_v18 = vmul.f32 %v1442_v24, %v541_v14  ;;  %v667_v19 = vmul.f32 %v1442_v24, %v605_v15 }
 0x136   : > { %v708_v17 = vadd.f32 %v1448_v26, %v669_v13  ;;  %v978_v20 = vpop.f32.mrf.mxu0  ;;  %v994_v21 = vpop.f32.mrf.mxu1 }
 0x137   : > { %724 = vst [vmem:[%s1456_s9 + $0x50] sm:$0xff] %v692_v16  ;;  %v690_v22 = vadd.f32 %v1448_v26, %v651_v18  ;;  %v706_v23 = vadd.f32 %v1448_v26, %v667_v19  ;;  %v654_v25 = vmul.f32 %v978_v20, %v1442_v24  ;;  %v670_v27 = vmul.f32 %v994_v21, %v1442_v24 }
 0x138   : > { %740 = vst [vmem:[%s1456_s9 + $0xd0] sm:$0xff] %v708_v17  ;;  %v544_v28 = vpop.f32.mrf.mxu0  ;;  %v608_v29 = vpop.f32.mrf.mxu1 }
 0x139   : > { %722 = vst [vmem:[%s1456_s9 + $0x40] sm:$0xff] %v690_v22  ;;  %738 = vst [vmem:[%s1456_s9 + $0xc0] sm:$0xff] %v706_v23  ;;  %v693_v30 = vadd.f32 %v1448_v26, %v654_v25  ;;  %v709_v31 = vadd.f32 %v1448_v26, %v670_v27  ;;  %v652_v32 = vmul.f32 %v1442_v24, %v544_v28 }
 0x13a   : > { %v668_v33 = vmul.f32 %v1442_v24, %v608_v29  ;;  %v981_v34 = vpop.f32.mrf.mxu0  ;;  %v997_v35 = vpop.f32.mrf.mxu1 }
 0x13b   : > { %725 = vst [vmem:[%s1456_s9 + $0x58] sm:$0xff] %v693_v30  ;;  %741 = vst [vmem:[%s1456_s9 + $0xd8] sm:$0xff] %v709_v31  ;;  %v691_v36 = vadd.f32 %v1448_v26, %v652_v32  ;;  %v657_v38 = vmul.f32 %v981_v34, %v1442_v24  ;;  %v673_v39 = vmul.f32 %v997_v35, %v1442_v24 }
 0x13c   : > { %v707_v37 = vadd.f32 %v1448_v26, %v668_v33  ;;  %v557_v40 = vpop.f32.mrf.mxu0  ;;  %v621_v41 = vpop.f32.mrf.mxu1 }
 0x13d   : > { %723 = vst [vmem:[%s1456_s9 + $0x48] sm:$0xff] %v691_v36  ;;  %v696_v42 = vadd.f32 %v1448_v26, %v657_v38  ;;  %v712_v43 = vadd.f32 %v1448_v26, %v673_v39  ;;  %v655_v44 = vmul.f32 %v1442_v24, %v557_v40  ;;  %v671_v45 = vmul.f32 %v1442_v24, %v621_v41 }
 0x13e   : > { %739 = vst [vmem:[%s1456_s9 + $0xc8] sm:$0xff] %v707_v37  ;;  %v982_v46 = vpop.f32.mrf.mxu0  ;;  %v998_v47 = vpop.f32.mrf.mxu1 }
 0x13f   : > { %728 = vst [vmem:[%s1456_s9 + $0x70] sm:$0xff] %v696_v42  ;;  %744 = vst [vmem:[%s1456_s9 + $0xf0] sm:$0xff] %v712_v43  ;;  %v694_v48 = vadd.f32 %v1448_v26, %v655_v44  ;;  %v710_v49 = vadd.f32 %v1448_v26, %v671_v45  ;;  %v658_v50 = vmul.f32 %v982_v46, %v1442_v24 }
 0x140   : > { %v674_v51 = vmul.f32 %v998_v47, %v1442_v24  ;;  %v560_v52 = vpop.f32.mrf.mxu0  ;;  %v624_v53 = vpop.f32.mrf.mxu1 }
 0x141   : > { %726 = vst [vmem:[%s1456_s9 + $0x60] sm:$0xff] %v694_v48  ;;  %742 = vst [vmem:[%s1456_s9 + $0xe0] sm:$0xff] %v710_v49  ;;  %v697_v54 = vadd.f32 %v1448_v26, %v658_v50  ;;  %v656_v56 = vmul.f32 %v1442_v24, %v560_v52  ;;  %v672_v57 = vmul.f32 %v1442_v24, %v624_v53 }
 0x142   : > { %v713_v55 = vadd.f32 %v1448_v26, %v674_v51 }
 0x143   : > { %729 = vst [vmem:[%s1456_s9 + $0x78] sm:$0xff] %v697_v54  ;;  %v695_v58 = vadd.f32 %v1448_v26, %v656_v56  ;;  %v711_v59 = vadd.f32 %v1448_v26, %v672_v57 }
 0x144   : > { %745 = vst [vmem:[%s1456_s9 + $0xf8] sm:$0xff] %v713_v55 }
 0x145   : > { %727 = vst [vmem:[%s1456_s9 + $0x68] sm:$0xff] %v695_v58  ;;  %743 = vst [vmem:[%s1456_s9 + $0xe8] sm:$0xff] %v711_v59 }
 0x146   : > { %1183 = shalt.err (!%p1180_p5)
}
 0x147   : > { %s1184_s6 = scalar_lea.hbm %s1547_s18, 4096  ;;  %s1188_s27 = scalar_lea.hbm %s1607_s4, 8192 }
 0x148   : > { %p1185_p7 = scmp.ne.s32.totalorder %s1547_s18, %s1184_s6  ;;  %p1189_p9 = scmp.lt.s32.totalorder %s1547_s18, %s1607_s4 }
 0x149   : > { %p1190_p11 = scmp.lt.s32.totalorder %s1188_s27, %s1184_s6 }
 0x14a   : > { %p1186_p4 = pnand %p1185_p7, %p1378_p13 }
 0x14b   : > { %p1191_p10 = por %p1190_p11, %p1189_p9 }
 0x14c   : > { %p1187_p6 = pneg %p1186_p4 }
 0x14e   : > { %p1192_p1 = pnand %p1191_p10, %p1187_p6 }
 0x150   : > { %1195 = shalt.err (!%p1192_p1)
}
 0x151   : > { %s1261_s9 = smov 128   ;;  %s1262_s10 = smov 8  }
 0x152   : > { %1021 = dma.vmem_to_hbm [thread:$0]  (%p1378_p13), %s1549_s24, 4096, %s1547_s18, %s747_s29, %s1261_s9, %s1261_s9, %s1262_s10  }
 0x153 PF: > { %s776_s14 = sand.u32 1, %s1234_s15   ;;  %p1625_p8 = scmp.ne.s32.totalorder %s1615_s26, 0 }
 0x154   : > { %p1626_p12 = scmp.ge.s32.totalorder %s1254_s20, 2  ;;  %s777_s11 = scalar_lea.sflag [#allocation4], %s776_s14 }
 0x156   : > { %p1032_p0 = pnand %p1626_p12, %p1625_p8 }
 0x158   : > { %p1033_p2 = pneg %p1032_p0 }
 0x15a   : > { %1229 = dma.done.wait (%p1033_p2), %s777_s11, 4096  }
 0x15b   : > { %1231 = vsyncadd (%p1033_p2), %s777_s11, 4294963200  ;;  %s21_s20 = sadd.s32 1, %s1254_s20   ;;  %s1627_s15 = smov %s1238_s16 }
 0x15c   : > { %p18_p3 = scmp.ge.s32.totalorder %s21_s20, 4   ;;  %s1628_s16 = smov %s1242_s17 }
 0x15d   : > { %s1629_s17 = smov %s1387_s28  ;;  %s1630_s18 = smov %s1250_s19 }
 0x15e   : > { %s1631_s19 = smov %s1633_s5  ;;  %20 = sbr.rel (!%p18_p3) target bundleno = 9 (0x9), region = 92 }
 0x163   :  { %782 = vsyncpa [#allocation3], 1 }
 0x164   :  { %784 = vsyncpa [#allocation3 + $0x1], 1 }
 0x165   :  { %785 = vsyncpa [#allocation6], 1 }
 0x166   :  { %786 = vsyncpa [#allocation4], 1 }
 0x167   :  { %788 = vsyncpa [#allocation4 + $0x1], 1 }

</bundles_post_ra>
